<compile_context>
chip_gen: v7x
topology: tpu7x:2x2x1
jax: 0.10.0
libtpu: 0.0.40
codegen_flags: <defaults>
</compile_context>

<pallas_src>
import jax
import jax.numpy as jnp
import numpy as np
from jax.experimental import pallas as pl
from jax.experimental.pallas import tpu as pltpu


def _round_up(x, m):
    return (x + m - 1) // m * m


def _cdiv(a, b):
    return (a + b - 1) // b


def _pick_tile(batch, tb_max=2048):
    """Rows per grid step: multiple of 8, <= tb_max, >= 2 grid steps whenever
    the batch is big enough (keeps both v7x TensorCores busy), and padding
    waste bounded to less than one tile."""
    b8 = _round_up(max(batch, 8), 8)
    if b8 <= 16:                       # tiny batch: one step is cheapest
        return b8
    n_tiles = max(2, _cdiv(b8, tb_max))
    return _round_up(_cdiv(b8, n_tiles), 8)


def _qnet_kernel(x_ref, w1_ref, b1_ref, w2_ref, b2_ref, w3_ref, b3_ref, out_ref):
    """One batch tile of the 3-layer MLP. Weights stay resident in VMEM
    (constant index maps), only the (TB, 8) input/output tiles stream."""
    # Layer 1: (TB, 8) @ (8, 256)  (cols 6..7 of x and rows 6..7 of W1 are 0)
    h1 = jnp.dot(x_ref[...], w1_ref[...], preferred_element_type=jnp.float32)
    h1 = jnp.maximum(h1 + b1_ref[...], 0.0)                       # (TB, 256)

    # Layer 2: (TB, 256) @ (256, 256)
    h2 = jnp.dot(h1, w2_ref[...], preferred_element_type=jnp.float32)
    h2 = jnp.maximum(h2 + b2_ref[...], 0.0)                       # (TB, 256)

    # Layer 3: (TB, 256) @ (256, 8)  (cols 4..7 are zero padding)
    out = jnp.dot(h2, w3_ref[...], preferred_element_type=jnp.float32)
    out_ref[...] = out + b3_ref[...]                              # (TB, 8)


def prepare_params(params):
    """One-time packing of the nn.Linear parameters for the kernel:
    W1 (6,256)->(8,256) zero-padded rows; W3 (256,4)->(256,8) and
    b3 (1,4)->(1,8) zero-padded columns. Call once, reuse across forwards."""
    (w1, b1), (w2, b2), (w3, b3) = params
    w1p = jnp.zeros((8, 256), jnp.float32).at[:6, :].set(w1.astype(jnp.float32))
    w3p = jnp.zeros((256, 8), jnp.float32).at[:, :4].set(w3.astype(jnp.float32))
    b3p = jnp.zeros((1, 8), jnp.float32).at[:, :4].set(b3.astype(jnp.float32))
    return (w1p, b1.astype(jnp.float32), w2.astype(jnp.float32),
            b2.astype(jnp.float32), w3p, b3p)


@jax.jit
def goal_deep_q_net_forward(state, goal, prepped_params):
    """Reshape / concat / pad in plain JAX, the MLP runs inside one Pallas kernel."""
    w1p, b1, w2, b2, w3p, b3p = prepped_params
    state = state.reshape(-1, 3).astype(jnp.float32)
    goal = goal.reshape(-1, 3).astype(jnp.float32)
    B = state.shape[0]

    TB = _pick_tile(B)
    B_pad = _round_up(B, TB)

    # Merged, zero-padded input: (B_pad, 8) = [state | goal | 0 | 0]
    x = jnp.concatenate([state, goal], axis=1)                    # (B, 6)
    x = jnp.pad(x, ((0, B_pad - B), (0, 2)))                      # (B_pad, 8)

    grid = (B_pad // TB,)
    batch_spec = lambda i: (i, 0)
    const_spec = lambda i: (0, 0)    # weights/biases: same block every step

    out = pl.pallas_call(
        _qnet_kernel,
        out_shape=jax.ShapeDtypeStruct((B_pad, 8), jnp.float32),
        grid=grid,
        in_specs=[
            pl.BlockSpec((TB, 8), batch_spec),      # merged state|goal tile
            pl.BlockSpec((8, 256), const_spec),     # W1 (row-padded)
            pl.BlockSpec((1, 256), const_spec),     # b1
            pl.BlockSpec((256, 256), const_spec),   # W2
            pl.BlockSpec((1, 256), const_spec),     # b2
            pl.BlockSpec((256, 8), const_spec),     # W3 (col-padded)
            pl.BlockSpec((1, 8), const_spec),       # b3 (col-padded)
        ],
        out_specs=pl.BlockSpec((TB, 8), batch_spec),
        compiler_params=pltpu.CompilerParams(
            dimension_semantics=("parallel",),
            vmem_limit_bytes=32 * 1024 * 1024),
    )(x, w1p, b1, w2, b2, w3p, b3p)

    return out[:B, :4]


def init_params(key):
    """PyTorch nn.Linear default init: U(-1/sqrt(fan_in), +1/sqrt(fan_in)).
    Weights stored as (in_features, out_features); biases as (1, out)."""
    sizes = [(6, 256), (256, 256), (256, 4)]
    params = []
    for (fan_in, fan_out) in sizes:
        key, kw, kb = jax.random.split(key, 3)
        bound = 1.0 / np.sqrt(fan_in)
        w = jax.random.uniform(kw, (fan_in, fan_out), jnp.float32, -bound, bound)
        b = jax.random.uniform(kb, (1, fan_out), jnp.float32, -bound, bound)
        params.append((w, b))
    return params


def _reference_forward(state, goal, params):
    """Pure-f32 JAX reference matching the PyTorch module."""
    x = jnp.concatenate([state.reshape(-1, 3), goal.reshape(-1, 3)], axis=1)
    (w1, b1), (w2, b2), (w3, b3) = params
    h1 = jnp.maximum(x @ w1 + b1, 0.0)
    h2 = jnp.maximum(h1 @ w2 + b2, 0.0)
    return h2 @ w3 + b3


if __name__ == "__main__":
    key = jax.random.PRNGKey(0)
    kp, ks, kg = jax.random.split(key, 3)
    params = init_params(kp)
    prepped = prepare_params(params)      # one-time weight packing

    # Case 1: tiny batch (single grid step, TB = 8).
    B1 = 8
    state1 = jax.random.normal(ks, (B1, 3), jnp.float32)
    goal1 = jax.random.normal(kg, (B1, 3), jnp.float32)
    out1 = jax.block_until_ready(goal_deep_q_net_forward(state1, goal1, prepped))
    ref1 = _reference_forward(state1, goal1, params)
    np.testing.assert_allclose(np.asarray(out1), np.asarray(ref1), rtol=2e-2, atol=2e-2)
    assert out1.shape == (B1, 4)

    # Case 2: awkward batch (B=603 -> padded to 608, grid of 2 tiles of 304 rows).
    B2 = 603
    ks2, kg2 = jax.random.split(jax.random.PRNGKey(1))
    state2 = jax.random.normal(ks2, (B2, 3), jnp.float32)
    goal2 = jax.random.normal(kg2, (B2, 3), jnp.float32)
    out2 = jax.block_until_ready(goal_deep_q_net_forward(state2, goal2, prepped))
    ref2 = _reference_forward(state2, goal2, params)
    np.testing.assert_allclose(np.asarray(out2), np.asarray(ref2), rtol=2e-2, atol=2e-2)
    assert out2.shape == (B2, 4)

    print("KERNEL_OK")
</pallas_src>

<mosaic_0001>
module attributes {stable_mosaic.version = 11 : i64} {
  func.func @_qnet_kernel(%arg0: i32, %arg1: memref<8x8xf32, #tpu.memory_space<vmem>>, %arg2: memref<8x256xf32, #tpu.memory_space<vmem>>, %arg3: memref<1x256xf32, #tpu.memory_space<vmem>>, %arg4: memref<256x256xf32, #tpu.memory_space<vmem>>, %arg5: memref<1x256xf32, #tpu.memory_space<vmem>>, %arg6: memref<256x8xf32, #tpu.memory_space<vmem>>, %arg7: memref<1x8xf32, #tpu.memory_space<vmem>>, %arg8: memref<8x8xf32, #tpu.memory_space<vmem>>) attributes {dimension_semantics = [#tpu.dimension_semantics<parallel>], iteration_bounds = array<i64: 1>, scalar_prefetch = 0 : i64, scratch_operands = 0 : i64, tpu.core_type = #tpu.core_type<tc>, window_params = [{transform_indices = @transform_0, window_bounds = array<i64: 8, 8>}, {pipeline_mode = #tpu.pipeline_mode<synchronous>, transform_indices = @transform_1, window_bounds = array<i64: 8, 256>}, {pipeline_mode = #tpu.pipeline_mode<synchronous>, transform_indices = @transform_2, window_bounds = array<i64: 1, 256>}, {pipeline_mode = #tpu.pipeline_mode<synchronous>, transform_indices = @transform_3, window_bounds = array<i64: 256, 256>}, {pipeline_mode = #tpu.pipeline_mode<synchronous>, transform_indices = @transform_4, window_bounds = array<i64: 1, 256>}, {pipeline_mode = #tpu.pipeline_mode<synchronous>, transform_indices = @transform_5, window_bounds = array<i64: 256, 8>}, {pipeline_mode = #tpu.pipeline_mode<synchronous>, transform_indices = @transform_6, window_bounds = array<i64: 1, 8>}, {transform_indices = @transform_7, window_bounds = array<i64: 8, 8>}]} {
    %c0 = arith.constant 0 : index
    %c0_0 = arith.constant 0 : index
    %0 = vector.load %arg1[%c0, %c0_0] : memref<8x8xf32, #tpu.memory_space<vmem>>, vector<8x8xf32>
    %c0_1 = arith.constant 0 : index
    %c0_2 = arith.constant 0 : index
    %1 = vector.load %arg2[%c0_1, %c0_2] : memref<8x256xf32, #tpu.memory_space<vmem>>, vector<8x256xf32>
    %cst = arith.constant dense<0.000000e+00> : vector<8x256xf32>
    %2 = tpu.matmul %0, %1, %cst {dimension_numbers = #tpu.dot_dimension_numbers<[1], [0], [0], [1], [0, 0, 1, 1], [], []>} : vector<8x8xf32>, vector<8x256xf32>, vector<8x256xf32> -> vector<8x256xf32>
    %c0_3 = arith.constant 0 : index
    %c0_4 = arith.constant 0 : index
    %3 = vector.load %arg3[%c0_3, %c0_4] : memref<1x256xf32, #tpu.memory_space<vmem>>, vector<1x256xf32>
    %4 = vector.broadcast %3 : vector<1x256xf32> to vector<8x256xf32>
    %5 = arith.addf %2, %4 : vector<8x256xf32>
    %cst_5 = arith.constant 0.000000e+00 : f32
    %6 = vector.broadcast %cst_5 : f32 to vector<8x256xf32>
    %7 = arith.maximumf %5, %6 : vector<8x256xf32>
    %c0_6 = arith.constant 0 : index
    %c0_7 = arith.constant 0 : index
    %8 = vector.load %arg4[%c0_6, %c0_7] : memref<256x256xf32, #tpu.memory_space<vmem>>, vector<256x256xf32>
    %cst_8 = arith.constant dense<0.000000e+00> : vector<8x256xf32>
    %9 = tpu.matmul %7, %8, %cst_8 {dimension_numbers = #tpu.dot_dimension_numbers<[1], [0], [0], [1], [0, 0, 1, 1], [], []>} : vector<8x256xf32>, vector<256x256xf32>, vector<8x256xf32> -> vector<8x256xf32>
    %c0_9 = arith.constant 0 : index
    %c0_10 = arith.constant 0 : index
    %10 = vector.load %arg5[%c0_9, %c0_10] : memref<1x256xf32, #tpu.memory_space<vmem>>, vector<1x256xf32>
    %11 = vector.broadcast %10 : vector<1x256xf32> to vector<8x256xf32>
    %12 = arith.addf %9, %11 : vector<8x256xf32>
    %cst_11 = arith.constant 0.000000e+00 : f32
    %13 = vector.broadcast %cst_11 : f32 to vector<8x256xf32>
    %14 = arith.maximumf %12, %13 : vector<8x256xf32>
    %c0_12 = arith.constant 0 : index
    %c0_13 = arith.constant 0 : index
    %15 = vector.load %arg6[%c0_12, %c0_13] : memref<256x8xf32, #tpu.memory_space<vmem>>, vector<256x8xf32>
    %cst_14 = arith.constant dense<0.000000e+00> : vector<8x8xf32>
    %16 = tpu.matmul %14, %15, %cst_14 {dimension_numbers = #tpu.dot_dimension_numbers<[1], [0], [0], [1], [0, 0, 1, 1], [], []>} : vector<8x256xf32>, vector<256x8xf32>, vector<8x8xf32> -> vector<8x8xf32>
    %c0_15 = arith.constant 0 : index
    %c0_16 = arith.constant 0 : index
    %17 = vector.load %arg7[%c0_15, %c0_16] : memref<1x8xf32, #tpu.memory_space<vmem>>, vector<1x8xf32>
    %18 = vector.broadcast %17 : vector<1x8xf32> to vector<8x8xf32>
    %19 = arith.addf %16, %18 : vector<8x8xf32>
    %c0_17 = arith.constant 0 : index
    %c0_18 = arith.constant 0 : index
    %20 = vector.load %arg8[%c0_17, %c0_18] : memref<8x8xf32, #tpu.memory_space<vmem>>, vector<8x8xf32>
    tpu.vector_store %arg8[%c0_17, %c0_18], %19 {strides = array<i32>} : memref<8x8xf32, #tpu.memory_space<vmem>>, vector<8x8xf32>,
    return
  }
  func.func @transform_0(%arg0: i32) -> (i32, i32) {
    %c0_i32 = arith.constant 0 : i32
    %c0_i32_0 = arith.constant 0 : i32
    return %arg0, %c0_i32 : i32, i32
  }
  func.func @transform_1(%arg0: i32) -> (i32, i32) {
    %c0_i32 = arith.constant 0 : i32
    %c0_i32_0 = arith.constant 0 : i32
    %c0_i32_1 = arith.constant 0 : i32
    return %c0_i32, %c0_i32_0 : i32, i32
  }
  func.func @transform_2(%arg0: i32) -> (i32, i32) {
    %c0_i32 = arith.constant 0 : i32
    %c0_i32_0 = arith.constant 0 : i32
    %c0_i32_1 = arith.constant 0 : i32
    return %c0_i32, %c0_i32_0 : i32, i32
  }
  func.func @transform_3(%arg0: i32) -> (i32, i32) {
    %c0_i32 = arith.constant 0 : i32
    %c0_i32_0 = arith.constant 0 : i32
    %c0_i32_1 = arith.constant 0 : i32
    return %c0_i32, %c0_i32_0 : i32, i32
  }
  func.func @transform_4(%arg0: i32) -> (i32, i32) {
    %c0_i32 = arith.constant 0 : i32
    %c0_i32_0 = arith.constant 0 : i32
    %c0_i32_1 = arith.constant 0 : i32
    return %c0_i32, %c0_i32_0 : i32, i32
  }
  func.func @transform_5(%arg0: i32) -> (i32, i32) {
    %c0_i32 = arith.constant 0 : i32
    %c0_i32_0 = arith.constant 0 : i32
    %c0_i32_1 = arith.constant 0 : i32
    return %c0_i32, %c0_i32_0 : i32, i32
  }
  func.func @transform_6(%arg0: i32) -> (i32, i32) {
    %c0_i32 = arith.constant 0 : i32
    %c0_i32_0 = arith.constant 0 : i32
    %c0_i32_1 = arith.constant 0 : i32
    return %c0_i32, %c0_i32_0 : i32, i32
  }
  func.func @transform_7(%arg0: i32) -> (i32, i32) {
    %c0_i32 = arith.constant 0 : i32
    %c0_i32_0 = arith.constant 0 : i32
    return %arg0, %c0_i32 : i32, i32
  }
}

</mosaic_0001>

<bundles_post_ra>
// kernel: goal_deep_q_net_forward.1
= control target key start
LH: loop header
LB: loop body
LE: loop exit
PB: predicated region body
PF: predicated region fallthrough
CT: control target
= control target key end

     0   :  { %12 = vsyncpa [#allocation3], 0  ;;  %s557_s24 = smov [#allocation2]   ;;  %s732_s0 = inlined_call_operand.vmem [shape: f32[8,8], index: 0, kind: input, shape index: {}]   ;;  %s733_s1 = inlined_call_operand.vmem [shape: f32[8,256], index: 1, kind: input, shape index: {}]   ;;  %s734_s2 = inlined_call_operand.vmem [shape: f32[1,256], index: 2, kind: input, shape index: {}]   ;;  %s735_s3 = inlined_call_operand.hbm [shape: f32[256,256], index: 3, kind: input, shape index: {}]   ;;  %s736_s4 = inlined_call_operand.vmem [shape: f32[1,256], index: 4, kind: input, shape index: {}]   ;;  %s737_s5 = inlined_call_operand.vmem [shape: f32[256,8], index: 5, kind: input, shape index: {}]   ;;  %s738_s6 = inlined_call_operand.vmem [shape: f32[1,8], index: 6, kind: input, shape index: {}]   ;;  %s739_s7 = inlined_call_operand.vmem [shape: f32[8,8], index: 7, kind: output, shape index: {}]  }
   0x1   :  { %s24_s25 = sshll.u32 %s557_s24, 4  ;;  %s533_s28 = scalar_lea.hbm %s735_s3, 8192  ;;  %s25_s25 = int_to_ptr.vmem [resolvable:$true] %s24_s25 }
   0x2   :  { %p534_p0 = scmp.ne.s32.totalorder %s735_s3, %s533_s28  ;;  %p537_p1 = scmp.lt.u32.totalorder %s533_s28, %s735_s3 }
   0x4   :  { %p539_p2 = pnand %p537_p1, %p534_p0 }
   0x6   :  { %542 = shalt.err (!%p539_p2)
}
   0x7   :  { %s543_s10 = scalar_lea.vmem %s25_s25, 8192  ;;  %p548_p4 = scmp.lt.s32.totalorder %s25_s25, %s25_s25 }
   0x8   :  { %p544_p3 = scmp.ne.s32.totalorder %s25_s25, %s543_s10  ;;  %p549_p5 = scmp.lt.s32.totalorder %s543_s10, %s543_s10 }
   0xa   :  { %p550_p6 = por %p549_p5, %p548_p4 }
   0xc   :  { %p551_p7 = pnand %p550_p6, %p544_p3 }
   0xe   :  { %554 = shalt.err (!%p551_p7)
}
   0xf   :  { %s558_s11 = smov 256   ;;  %s559_s12 = smov 16  }
  0x10   :  { %30 = dma.hbm_to_vmem [thread:$0]  %s735_s3, 8192, %s25_s25, [#allocation3], %s558_s11, %s558_s11, %s559_s12  }
  0x11   :  { %555 = dma.done.wait [#allocation3], 8192  }
  0x12   :  { %556 = vsyncadd [#allocation3], 4294959104  ;;  %v560_v0 = vmov 0.0   ;;  %v42_v1 = vld [vmem:[%s733_s1 + $0x8] sm:$0xff]  ;;  %v41_v2 = vld [vmem:[%s733_s1] sm:$0xff]  ;;  %vm55_vm0 = vcmask 64512  }
  0x13   :  { %123 = vmatprep.mubr.f32.mxu0 %v560_v0  ;;  %v40_v3 = vld [vmem:[%s732_s0] sm:$0xff]  ;;  %59 = vmatprep.subr.mxu0 %v42_v1  ;;  %v133_v4 = vld [vmem:[#allocation2 + $0x8] sm:$0xff]  ;;  %v135_v5 = vld [vmem:[#allocation2 + $0x18] sm:$0xff] }
  0x14   :  { %v132_v6 = vld [vmem:[#allocation2] sm:$0xff]  ;;  %60 = vmatpush1.msra.mxu0 %v41_v2  ;;  %v433_v7 = vpack.c.bf16 %v135_v5, %v133_v4  ;;  %v134_v8 = vld [vmem:[#allocation2 + $0x10] sm:$0xff]  ;;  %v137_v9 = vld [vmem:[#allocation2 + $0x28] sm:$0xff] }
  0x15   :  { %v139_v10 = vld [vmem:[#allocation2 + $0x38] sm:$0xff]  ;;  %396 = vmatmul.mubr.msk.f32.vlgmr.msra.gmra.mrb[0].mxu0 %vm55_vm0, %v40_v3  ;;  %v435_v11 = vpack.c.bf16 %v134_v8, %v132_v6  ;;  %v136_v13 = vld [vmem:[#allocation2 + $0x20] sm:$0xff]  ;;  %v138_v14 = vld [vmem:[#allocation2 + $0x30] sm:$0xff] }
  0x16   :  { %v437_v12 = vpack.c.bf16 %v139_v10, %v137_v9  ;;  %v141_v15 = vld [vmem:[#allocation2 + $0x48] sm:$0xff]  ;;  %434 = vmatprep.subr.bf16.mxu1 %v433_v7  ;;  %v143_v16 = vld [vmem:[#allocation2 + $0x58] sm:$0xff]  ;;  %v439_v17 = vpack.c.bf16 %v138_v14, %v136_v13  ;;  %v140_v19 = vld [vmem:[#allocation2 + $0x40] sm:$0xff] }
  0x17   :  { %436 = vmatpush1.bf16.msra.mxu1 %v435_v11  ;;  %v441_v18 = vpack.c.bf16 %v143_v16, %v141_v15  ;;  %v142_v20 = vld [vmem:[#allocation2 + $0x50] sm:$0xff]  ;;  %v145_v21 = vld [vmem:[#allocation2 + $0x68] sm:$0xff]  ;;  %v147_v22 = vld [vmem:[#allocation2 + $0x78] sm:$0xff] }
  0x18   :  { %438 = vmatprep.subr.bf16.mxu1 %v437_v12  ;;  %v443_v23 = vpack.c.bf16 %v142_v20, %v140_v19  ;;  %v445_v24 = vpack.c.bf16 %v147_v22, %v145_v21  ;;  %v144_v25 = vld [vmem:[#allocation2 + $0x60] sm:$0xff]  ;;  %v146_v26 = vld [vmem:[#allocation2 + $0x70] sm:$0xff]  ;;  %v149_v27 = vld [vmem:[#allocation2 + $0x88] sm:$0xff] }
  0x19   :  { %v151_v28 = vld [vmem:[#allocation2 + $0x98] sm:$0xff]  ;;  %v447_v29 = vpack.c.bf16 %v146_v26, %v144_v25  ;;  %v148_v31 = vld [vmem:[#allocation2 + $0x80] sm:$0xff]  ;;  %v150_v32 = vld [vmem:[#allocation2 + $0x90] sm:$0xff] }
  0x1a   :  { %v449_v30 = vpack.c.bf16 %v151_v28, %v149_v27  ;;  %v153_v33 = vld [vmem:[#allocation2 + $0xa8] sm:$0xff]  ;;  %v155_v34 = vld [vmem:[#allocation2 + $0xb8] sm:$0xff]  ;;  %v451_v35 = vpack.c.bf16 %v150_v32, %v148_v31  ;;  %v152_v37 = vld [vmem:[#allocation2 + $0xa0] sm:$0xff] }
  0x1b   :  { %440 = vmatpush1.bf16.msra.mxu1 %v439_v17  ;;  %v453_v36 = vpack.c.bf16 %v155_v34, %v153_v33  ;;  %v154_v38 = vld [vmem:[#allocation2 + $0xb0] sm:$0xff]  ;;  %v157_v39 = vld [vmem:[#allocation2 + $0xc8] sm:$0xff]  ;;  %v159_v40 = vld [vmem:[#allocation2 + $0xd8] sm:$0xff] }
  0x1c   :  { %442 = vmatprep.subr.bf16.mxu1 %v441_v18  ;;  %v455_v41 = vpack.c.bf16 %v154_v38, %v152_v37  ;;  %v457_v42 = vpack.c.bf16 %v159_v40, %v157_v39  ;;  %v156_v43 = vld [vmem:[#allocation2 + $0xc0] sm:$0xff]  ;;  %v158_v44 = vld [vmem:[#allocation2 + $0xd0] sm:$0xff]  ;;  %v161_v45 = vld [vmem:[#allocation2 + $0xe8] sm:$0xff] }
  0x1d   :  { %v163_v46 = vld [vmem:[#allocation2 + $0xf8] sm:$0xff]  ;;  %v459_v47 = vpack.c.bf16 %v158_v44, %v156_v43  ;;  %v160_v49 = vld [vmem:[#allocation2 + $0xe0] sm:$0xff]  ;;  %v162_v50 = vld [vmem:[#allocation2 + $0xf0] sm:$0xff] }
  0x1e   :  { %v461_v48 = vpack.c.bf16 %v163_v46, %v161_v45  ;;  %v165_v51 = vld [vmem:[#allocation2 + $0x108] sm:$0xff]  ;;  %v167_v52 = vld [vmem:[#allocation2 + $0x118] sm:$0xff]  ;;  %v463_v53 = vpack.c.bf16 %v162_v50, %v160_v49  ;;  %v164_v55 = vld [vmem:[#allocation2 + $0x100] sm:$0xff] }
  0x1f   :  { %444 = vmatpush1.bf16.msra.mxu1 %v443_v23  ;;  %v465_v54 = vpack.c.bf16 %v167_v52, %v165_v51  ;;  %v166_v56 = vld [vmem:[#allocation2 + $0x110] sm:$0xff]  ;;  %v169_v57 = vld [vmem:[#allocation2 + $0x128] sm:$0xff]  ;;  %v171_v58 = vld [vmem:[#allocation2 + $0x138] sm:$0xff] }
  0x20   :  { %446 = vmatprep.subr.bf16.mxu1 %v445_v24  ;;  %v467_v59 = vpack.c.bf16 %v166_v56, %v164_v55  ;;  %v469_v60 = vpack.c.bf16 %v171_v58, %v169_v57  ;;  %v168_v61 = vld [vmem:[#allocation2 + $0x120] sm:$0xff]  ;;  %v170_v62 = vld [vmem:[#allocation2 + $0x130] sm:$0xff]  ;;  %v173_v63 = vld [vmem:[#allocation2 + $0x148] sm:$0xff] }
  0x21   :  { %v175_v0 = vld [vmem:[#allocation2 + $0x158] sm:$0xff]  ;;  %v471_v1 = vpack.c.bf16 %v170_v62, %v168_v61  ;;  %v172_v3 = vld [vmem:[#allocation2 + $0x140] sm:$0xff]  ;;  %v174_v4 = vld [vmem:[#allocation2 + $0x150] sm:$0xff] }
  0x22   :  { %v473_v2 = vpack.c.bf16 %v175_v0, %v173_v63  ;;  %v177_v5 = vld [vmem:[#allocation2 + $0x168] sm:$0xff]  ;;  %v179_v6 = vld [vmem:[#allocation2 + $0x178] sm:$0xff]  ;;  %v475_v7 = vpack.c.bf16 %v174_v4, %v172_v3  ;;  %v176_v9 = vld [vmem:[#allocation2 + $0x160] sm:$0xff] }
  0x23   :  { %448 = vmatpush1.bf16.msra.mxu1 %v447_v29  ;;  %v477_v8 = vpack.c.bf16 %v179_v6, %v177_v5  ;;  %v178_v10 = vld [vmem:[#allocation2 + $0x170] sm:$0xff]  ;;  %v181_v11 = vld [vmem:[#allocation2 + $0x188] sm:$0xff]  ;;  %v183_v12 = vld [vmem:[#allocation2 + $0x198] sm:$0xff] }
  0x24   :  { %450 = vmatprep.subr.bf16.mxu1 %v449_v30  ;;  %v479_v13 = vpack.c.bf16 %v178_v10, %v176_v9  ;;  %v481_v14 = vpack.c.bf16 %v183_v12, %v181_v11  ;;  %v180_v15 = vld [vmem:[#allocation2 + $0x180] sm:$0xff]  ;;  %v182_v16 = vld [vmem:[#allocation2 + $0x190] sm:$0xff]  ;;  %v185_v17 = vld [vmem:[#allocation2 + $0x1a8] sm:$0xff]  ;;  %v45_v11 = vlaneseq }
  0x25   :  { %v187_v18 = vld [vmem:[#allocation2 + $0x1b8] sm:$0xff]  ;;  %v483_v19 = vpack.c.bf16 %v182_v16, %v180_v15  ;;  %v184_v21 = vld [vmem:[#allocation2 + $0x1a0] sm:$0xff]  ;;  %v186_v22 = vld [vmem:[#allocation2 + $0x1b0] sm:$0xff] }
  0x26   :  { %v485_v20 = vpack.c.bf16 %v187_v18, %v185_v17  ;;  %v189_v23 = vld [vmem:[#allocation2 + $0x1c8] sm:$0xff]  ;;  %v191_v24 = vld [vmem:[#allocation2 + $0x1d8] sm:$0xff]  ;;  %v487_v25 = vpack.c.bf16 %v186_v22, %v184_v21  ;;  %v188_v27 = vld [vmem:[#allocation2 + $0x1c0] sm:$0xff]  ;;  %v46_v12 = vshrl.u32 %v45_v11, 7 }
  0x27   :  { %452 = vmatpush1.bf16.msra.mxu1 %v451_v35  ;;  %v489_v26 = vpack.c.bf16 %v191_v24, %v189_v23  ;;  %v190_v28 = vld [vmem:[#allocation2 + $0x1d0] sm:$0xff]  ;;  %v193_v30 = vld [vmem:[#allocation2 + $0x1e8] sm:$0xff]  ;;  %v195_v31 = vld [vmem:[#allocation2 + $0x1f8] sm:$0xff] }
  0x28   :  { %454 = vmatprep.subr.bf16.mxu1 %v453_v36  ;;  %v491_v29 = vpack.c.bf16 %v190_v28, %v188_v27  ;;  %v493_v32 = vpack.c.bf16 %v195_v31, %v193_v30  ;;  %v192_v33 = vld [vmem:[#allocation2 + $0x1e0] sm:$0xff]  ;;  %v194_v34 = vld [vmem:[#allocation2 + $0x1f0] sm:$0xff]  ;;  %v298_v37 = vld [vmem:[%s737_s5 + $0x88] sm:$0xff]  ;;  %v51_v15 = vsub.s32 1, %v46_v12 }
  0x29   :  { %v495_v35 = vpack.c.bf16 %v194_v34, %v192_v33  ;;  %v297_v36 = vld [vmem:[%s737_s5 + $0x80] sm:$0xff]  ;;  %v282_v40 = vld [vmem:[%s737_s5 + $0x8] sm:$0xff]  ;;  %v283_v45 = vld [vmem:[%s737_s5 + $0x10] sm:$0xff] }
  0x2a   :  { %v281_v38 = vld [vmem:[%s737_s5] sm:$0xff]  ;;  %v497_v39 = vpack.c.bf16 %v298_v37, %v297_v36  ;;  %v284_v46 = vld [vmem:[%s737_s5 + $0x18] sm:$0xff]  ;;  %v286_v52 = vld [vmem:[%s737_s5 + $0x28] sm:$0xff] }
  0x2b   :  { %456 = vmatpush1.bf16.msra.mxu1 %v455_v41  ;;  %v299_v41 = vld [vmem:[%s737_s5 + $0x90] sm:$0xff]  ;;  %v499_v43 = vpack.c.bf16 %v282_v40, %v281_v38  ;;  %v503_v49 = vpack.c.bf16 %v284_v46, %v283_v45  ;;  %v285_v51 = vld [vmem:[%s737_s5 + $0x20] sm:$0xff]  ;;  %v288_v58 = vld [vmem:[%s737_s5 + $0x38] sm:$0xff] }
  0x2c   :  { %458 = vmatprep.subr.bf16.mxu1 %v457_v42  ;;  %v300_v42 = vld [vmem:[%s737_s5 + $0x98] sm:$0xff]  ;;  %498 = vmatprep.subr.bf16.mxu0 %v497_v39  ;;  %v507_v55 = vpack.c.bf16 %v286_v52, %v285_v51  ;;  %v287_v57 = vld [vmem:[%s737_s5 + $0x30] sm:$0xff]  ;;  %v289_v63 = vld [vmem:[%s737_s5 + $0x40] sm:$0xff] }
  0x2d   :  { %v501_v44 = vpack.c.bf16 %v300_v42, %v299_v41  ;;  %500 = vmatpush3.bf16.msra.mxu0 %v499_v43  ;;  %v511_v61 = vpack.c.bf16 %v288_v58, %v287_v57  ;;  %v290_v0 = vld [vmem:[%s737_s5 + $0x48] sm:$0xff]  ;;  %v291_v5 = vld [vmem:[%s737_s5 + $0x50] sm:$0xff]  ;;  %v292_v6 = vld [vmem:[%s737_s5 + $0x58] sm:$0xff] }
  0x2e   :  { %v515_v3 = vpack.c.bf16 %v290_v0, %v289_v63  ;;  %v519_v9 = vpack.c.bf16 %v292_v6, %v291_v5  ;;  %v293_v24 = vld [vmem:[%s737_s5 + $0x60] sm:$0xff]  ;;  %v311_v27 = vld [vmem:[%s737_s5 + $0xf0] sm:$0xff]  ;;  %v312_v28 = vld [vmem:[%s737_s5 + $0xf8] sm:$0xff] }
  0x2f   :  { %460 = vmatpush1.bf16.msra.mxu1 %v459_v47  ;;  %v301_v47 = vld [vmem:[%s737_s5 + $0xa0] sm:$0xff]  ;;  %502 = vmatprep.subr.bf16.mxu0 %v501_v44  ;;  %v295_v30 = vld [vmem:[%s737_s5 + $0x70] sm:$0xff]  ;;  %v296_v31 = vld [vmem:[%s737_s5 + $0x78] sm:$0xff] }
  0x30   :  { %462 = vmatprep.subr.bf16.mxu1 %v461_v48  ;;  %v302_v48 = vld [vmem:[%s737_s5 + $0xa8] sm:$0xff]  ;;  %v196_v33 = vld [vmem:[%s736_s4] sm:$0x3] }
  0x31   :  { %v505_v50 = vpack.c.bf16 %v302_v48, %v301_v47  ;;  %504 = vmatpush3.bf16.msra.mxu0 %v503_v49  ;;  %v397_v43 = vld [vmem:[%s738_s6] ss:$0 sm:$0xff] }
  0x33   :  { %464 = vmatpush1.bf16.msra.mxu1 %v463_v53  ;;  %v303_v53 = vld [vmem:[%s737_s5 + $0xb0] sm:$0xff]  ;;  %506 = vmatprep.subr.bf16.mxu0 %v505_v50 }
  0x34   :  { %466 = vmatprep.subr.bf16.mxu1 %v465_v54  ;;  %v304_v54 = vld [vmem:[%s737_s5 + $0xb8] sm:$0xff] }
  0x35   :  { %v509_v56 = vpack.c.bf16 %v304_v54, %v303_v53  ;;  %508 = vmatpush3.bf16.msra.mxu0 %v507_v55 }
  0x37   :  { %468 = vmatpush1.bf16.msra.mxu1 %v467_v59  ;;  %v305_v59 = vld [vmem:[%s737_s5 + $0xc0] sm:$0xff]  ;;  %510 = vmatprep.subr.bf16.mxu0 %v509_v56 }
  0x38   :  { %470 = vmatprep.subr.bf16.mxu1 %v469_v60  ;;  %v306_v60 = vld [vmem:[%s737_s5 + $0xc8] sm:$0xff] }
  0x39   :  { %v513_v62 = vpack.c.bf16 %v306_v60, %v305_v59  ;;  %512 = vmatpush3.bf16.msra.mxu0 %v511_v61 }
  0x3b   :  { %472 = vmatpush1.bf16.msra.mxu1 %v471_v1  ;;  %v307_v1 = vld [vmem:[%s737_s5 + $0xd0] sm:$0xff]  ;;  %514 = vmatprep.subr.bf16.mxu0 %v513_v62 }
  0x3c   :  { %474 = vmatprep.subr.bf16.mxu1 %v473_v2  ;;  %v308_v2 = vld [vmem:[%s737_s5 + $0xd8] sm:$0xff] }
  0x3d   :  { %v517_v4 = vpack.c.bf16 %v308_v2, %v307_v1  ;;  %516 = vmatpush3.bf16.msra.mxu0 %v515_v3 }
  0x3f   :  { %476 = vmatpush1.bf16.msra.mxu1 %v475_v7  ;;  %v309_v7 = vld [vmem:[%s737_s5 + $0xe0] sm:$0xff]  ;;  %518 = vmatprep.subr.bf16.mxu0 %v517_v4 }
  0x40   :  { %478 = vmatprep.subr.bf16.mxu1 %v477_v8  ;;  %v310_v8 = vld [vmem:[%s737_s5 + $0xe8] sm:$0xff] }
  0x41   :  { %v521_v10 = vpack.c.bf16 %v310_v8, %v309_v7  ;;  %520 = vmatpush3.bf16.msra.mxu0 %v519_v9 }
  0x43   :  { %480 = vmatpush1.bf16.msra.mxu1 %v479_v13  ;;  %522 = vmatprep.subr.bf16.mxu0 %v521_v10  ;;  %v47_v13 = vsub.s32 0, %v46_v12 }
  0x44   :  { %482 = vmatprep.subr.bf16.mxu1 %v481_v14  ;;  %v43_v14 = vld [vmem:[%s734_s2] sm:$0x3] }
  0x45   :  { %v48_v16 = vrot.slane %v43_v14, %v47_v13  ;;  %v52_v17 = vrot.slane %v43_v14, %v51_v15  ;;  %v201_v34 = vrot.slane %v196_v33, %v47_v13 }
  0x47   :  { %484 = vmatpush1.bf16.msra.mxu1 %v483_v19 }
  0x48   :  { %486 = vmatprep.subr.bf16.mxu1 %v485_v20 }
  0x4b   :  { %488 = vmatpush1.bf16.msra.mxu1 %v487_v25  ;;  %v294_v25 = vld [vmem:[%s737_s5 + $0x68] sm:$0xff] }
  0x4c   :  { %490 = vmatprep.subr.bf16.mxu1 %v489_v26  ;;  %v523_v26 = vpack.c.bf16 %v294_v25, %v293_v24 }
  0x4e   :  { %524 = vmatpush3.bf16.msra.mxu0 %v523_v26 }
  0x4f   :  { %492 = vmatpush1.bf16.msra.mxu1 %v491_v29  ;;  %v525_v29 = vpack.c.bf16 %v312_v28, %v311_v27 }
  0x50   :  { %494 = vmatprep.subr.bf16.mxu1 %v493_v32  ;;  %v527_v32 = vpack.c.bf16 %v296_v31, %v295_v30 }
  0x51   :  { %526 = vmatprep.subr.bf16.mxu0 %v525_v29 }
  0x52   :  { %528 = vmatpush3.bf16.msra.mxu0 %v527_v32 }
  0x53   :  { %496 = vmatpush1.bf16.msra.mxu1 %v495_v35  ;;  %v205_v35 = vrot.slane %v196_v33, %v51_v15 }
  0xe8   :  { %v125_v18 = vpop.f32.mrb[0].mxu0 }
  0xe9   :  { %v126_v19 = vadd.f32 %v125_v18, %v48_v16  ;;  %v127_v20 = vpop.f32.mrb[1].mxu0 }
  0xea   :  { %v128_v21 = vadd.f32 %v127_v20, %v52_v17 }
  0xeb   :  { %v130_v23 = vmax.f32 %v126_v19, 0.0 }
  0xec   :  { %v131_v22 = vmax.f32 %v128_v21, 0.0 }
  0xee   :  { %272 = vmatprep.mubr.f32.mxu1 %v131_v22 }
  0xef   :  { %273 = vmatmul.mubr.f32.vlgmr.msra.gmra.mrb[0].mxu1 %v130_v23 }
 0x1c2   :  { %v274_v36 = vpop.f32.mrb[0].mxu1 }
 0x1c3   :  { %v275_v37 = vadd.f32 %v274_v36, %v201_v34  ;;  %v276_v38 = vpop.f32.mrb[1].mxu1 }
 0x1c4   :  { %v277_v39 = vadd.f32 %v276_v38, %v205_v35 }
 0x1c5   :  { %v279_v41 = vmax.f32 %v275_v37, 0.0 }
 0x1c6   :  { %v280_v40 = vmax.f32 %v277_v39, 0.0 }
 0x1c8   :  { %384 = vmatprep.mubr.f32.mxu0 %v280_v40 }
 0x1c9   :  { %385 = vmatmul.mubr.f32.vlgmr.msra.gmra.mrb[2].mxu0 %v279_v41 }
 0x29c   :  { %v430_v42 = vpop.f32.mrb[2].mxu0 }
 0x29d   :  { %v431_v44 = vpop.f32.mrb[3].mxu0 }
 0x29e   :  { %v432_v45 = vadd.f32 %v431_v44, %v430_v42 }
 0x2a0   :  { %v387_v46 = vadd.f32 %v432_v45, %v397_v43 }
 0x2a2   :  { %390 = vst.msk [vmem:[%s739_s7] sm:$0xff] %vm55_vm0, %v387_v46 }
 0x2a3   :  { %395 = vsyncpa [#allocation3], 1 }

</bundles_post_ra>
